<compile_context>
chip_gen: v6e
topology: v6e:2x2x1
jax: 0.10.0
libtpu: 0.0.40
codegen_flags: <defaults>
</compile_context>

<pallas_src>
import functools

import jax
import jax.numpy as jnp
from jax import lax
from jax.experimental import pallas as pl
from jax.experimental.pallas import tpu as pltpu


PATCH = 4     # synthetic conv-stem: kernel == stride
LANE = 128    # TPU lane width; all slabs are padded to this
BAND = 8      # sublane band height for each logical output row-group (B <= 8)


# ----------------------------------------------------------------------------
# Fused Pallas kernel
# ----------------------------------------------------------------------------

def _clip_fused_kernel(data_ref, w1_ref, wproj_ref, p2_ref, out_ref, *,
                       batch, n_patches, seq_len, patch_dim, img_feat,
                       txt_hidden, proj_dim):
    f32 = jnp.float32
    n_img_rows = batch * n_patches
    n_txt_rows = batch * seq_len
    n_rows = n_img_rows + n_txt_rows
    cnt_col = img_feat + txt_hidden            # helper column -> pooling denominators
    mask_col = patch_dim + txt_hidden + 2      # data column holding 1 / attention-mask

    # ---- fused backbones: one block-diagonal matmul, biases folded in ------
    h = jnp.dot(data_ref[...], w1_ref[...], preferred_element_type=f32)   # [n_rows, 128]
    row_r = lax.broadcasted_iota(jnp.int32, (n_rows, LANE), 0)
    lane_r = lax.broadcasted_iota(jnp.int32, (n_rows, LANE), 1)
    # image rows: ReLU(conv+b); text rows: tanh(mix+b); off-block entries are 0.
    act = jnp.where(row_r < n_img_rows, jnp.maximum(h, 0.0), jnp.tanh(h))
    act = jnp.where(lane_r == cnt_col, h, act)            # keep the all-ones count column
    # per-row pooling weight: 1 for patch rows, attention-mask for token rows.
    act = act * data_ref[:, mask_col:mask_col + 1]

    # ---- fused mean / masked-mean pooling: one constant 0/1 selector -------
    # TODO(synk): selector is O(B^2) in VMEM/FLOPs; switch to a batch grid with
    # per-block selectors (dimension_semantics=('parallel',), v7x 64 MiB VMEM)
    # before scaling to production batch sizes.
    srow = lax.broadcasted_iota(jnp.int32, (2 * BAND, n_rows), 0)
    scol = lax.broadcasted_iota(jnp.int32, (2 * BAND, n_rows), 1)
    img_sel = ((srow < BAND) & (scol < n_img_rows)
               & (scol >= srow * n_patches) & (scol < (srow + 1) * n_patches))
    tcol = scol - n_img_rows
    tb = srow - BAND
    txt_sel = ((srow >= BAND) & (scol >= n_img_rows)
               & (tcol >= tb * seq_len) & (tcol < (tb + 1) * seq_len))
    sel = (img_sel | txt_sel).astype(f32)                               # [16, n_rows]
    pooled = jnp.dot(sel, act, preferred_element_type=f32)              # [16, 128]

    counts = pooled[:, cnt_col:cnt_col + 1]                             # [16, 1]
    brow = lax.broadcasted_iota(jnp.int32, (2 * BAND, 1), 0)
    denom = counts + jnp.where(brow < BAND, 0.0, 1e-8)   # exact /P (image), +1e-8 (text)
    denom = jnp.where(denom > 0.0, denom, 1.0)           # padded batch rows: avoid 0/0
    feats = pooled / denom                                              # [16, 128]

    # ---- fused projection heads: Linear -> Dropout(eval) -> LayerNorm -> normalize
    row_b = lax.broadcasted_iota(jnp.int32, (2 * BAND, LANE), 0)
    lane_b = lax.broadcasted_iota(jnp.int32, (2 * BAND, LANE), 1)
    is_img = row_b < BAND
    bias = jnp.where(is_img, p2_ref[0:1, :], p2_ref[3:4, :])
    gamma = jnp.where(is_img, p2_ref[1:2, :], p2_ref[4:5, :])
    beta = jnp.where(is_img, p2_ref[2:3, :], p2_ref[5:6, :])

    y = jnp.dot(feats, wproj_ref[...], preferred_element_type=f32) + bias   # [16, 128]
    lmask = (lane_b < proj_dim).astype(f32)
    inv_pd = 1.0 / proj_dim
    mu = jnp.sum(y, axis=-1, keepdims=True) * inv_pd
    cen = (y - mu) * lmask
    var = jnp.sum(cen * cen, axis=-1, keepdims=True) * inv_pd
    yn = cen * lax.rsqrt(var + 1e-5) * gamma + beta
    sumsq = jnp.sum(yn * yn, axis=-1, keepdims=True)
    emb = yn * lax.rsqrt(jnp.maximum(sumsq, 1e-24))      # F.normalize(dim=-1)

    # zero the padded batch rows so stored bands / logits are clean.
    valid = ((row_b < batch) | ((row_b >= BAND) & (row_b < BAND + batch))).astype(f32)
    emb = emb * valid
    out_ref[0:2 * BAND, :] = emb                         # bands 0/1: image & text embeds

    # ---- logits_per_image = (img @ txt.T) * (1/T); t2i = .T in the wrapper --
    img_scaled = emb[0:BAND, :] * p2_ref[6:7, :]         # p2 row 6 = 1/temperature
    i2t = lax.dot_general(img_scaled, emb[BAND:2 * BAND, :],
                          (((1,), (1,)), ((), ())),
                          preferred_element_type=f32)    # [8, 8]
    out_ref[2 * BAND:3 * BAND, :] = jnp.zeros((BAND, LANE), f32)
    out_ref[2 * BAND:3 * BAND, 0:BAND] = i2t             # band 2, lanes 0:8


# ----------------------------------------------------------------------------
# One-time parameter packing (kept OUT of the per-call jitted path)
# ----------------------------------------------------------------------------

def pack_params(p, *, patch_dim, img_feat, txt_hidden, proj_dim):
    f32 = jnp.float32
    K, F, Hh, PD = patch_dim, img_feat, txt_hidden, proj_dim
    assert K + Hh + 3 <= LANE and F + Hh + 1 <= LANE and PD <= LANE
    cnt_col = F + Hh
    img_ind, txt_ind = K + Hh, K + Hh + 1

    # backbone: block-diag weights + biases folded via indicator rows + count col
    w1 = jnp.zeros((LANE, LANE), f32)
    w1 = w1.at[0:K, 0:F].set(p["img_w"].astype(f32))
    w1 = w1.at[K:K + Hh, F:F + Hh].set(p["txt_wmix"].astype(f32))
    w1 = w1.at[img_ind, 0:F].set(p["img_b"].reshape(-1).astype(f32))
    w1 = w1.at[txt_ind, F:F + Hh].set(p["txt_bmix"].reshape(-1).astype(f32))
    w1 = w1.at[img_ind, cnt_col].set(1.0)
    w1 = w1.at[txt_ind, cnt_col].set(1.0)

    # projection: vstacked image/text weights, zero-padded to 128 lanes
    wproj = jnp.zeros((LANE, LANE), f32)
    wproj = wproj.at[0:F, 0:PD].set(p["ip_w"].astype(f32))
    wproj = wproj.at[F:F + Hh, 0:PD].set(p["tp_w"].astype(f32))

    # small params: one (8,128) tile
    p2 = jnp.zeros((BAND, LANE), f32)
    p2 = p2.at[0, 0:PD].set(p["ip_b"].reshape(-1).astype(f32))
    p2 = p2.at[1, 0:PD].set(p["ip_g"].reshape(-1).astype(f32))
    p2 = p2.at[2, 0:PD].set(p["ip_beta"].reshape(-1).astype(f32))
    p2 = p2.at[3, 0:PD].set(p["tp_b"].reshape(-1).astype(f32))
    p2 = p2.at[4, 0:PD].set(p["tp_g"].reshape(-1).astype(f32))
    p2 = p2.at[5, 0:PD].set(p["tp_beta"].reshape(-1).astype(f32))
    p2 = p2.at[6, :].set(1.0 / p["temperature"].reshape(()))   # 1/T precomputed
    return {"w1": w1, "wproj": wproj, "p2": p2, "tok_emb": p["tok_emb"].astype(f32)}


# ----------------------------------------------------------------------------
# Forward wrapper (XLA glue: patchify + embedding gather + slab building)
# ----------------------------------------------------------------------------

def _patchify_nchw(images, k):
    # NCHW -> [B, num_patches, C*k*k], matching conv2d(stride=k, kernel=k)
    B, C, H, W = images.shape
    ph, pw = H // k, W // k
    x = images.reshape(B, C, ph, k, pw, k)
    x = jnp.transpose(x, (0, 2, 4, 1, 3, 5))
    return x.reshape(B, ph * pw, C * k * k)


@functools.partial(jax.jit, static_argnames=("img_feat", "txt_hidden", "proj_dim"))
def clip_forward(packed, images, input_ids, attention_mask, *,
                 img_feat, txt_hidden, proj_dim):
    f32 = jnp.float32
    B, C, H, W = images.shape
    S = input_ids.shape[1]
    P = (H // PATCH) * (W // PATCH)
    K = C * PATCH * PATCH
    assert B <= BAND, "toy kernel assumes batch <= 8 (one sublane band)"

    n_img_rows, n_txt_rows = B * P, B * S
    n_rows = n_img_rows + n_txt_rows
    img_ind, txt_ind, mask_col = K + txt_hidden, K + txt_hidden + 1, K + txt_hidden + 2

    # TODO(synk): pretrained timm/HF backbones are replaced by a synthetic
    # patch-conv stem and a token-embedding + mixing layer; patchify and the
    # embedding gather stay in XLA.  'eos' pooling (data-dependent gather),
    # the classification head and the contrastive loss are not implemented.
    patches = _patchify_nchw(images.astype(f32), PATCH).reshape(n_img_rows, K)
    emb = jnp.take(packed["tok_emb"], input_ids, axis=0).reshape(n_txt_rows, txt_hidden)
    mask = attention_mask.astype(f32).reshape(n_txt_rows)

    # single lane-dense per-call activation slab (block-diag patches ⊕ tokens,
    # bias-indicator columns, per-row pooling-weight column)
    data = jnp.zeros((n_rows, LANE), f32)
    data = data.at[0:n_img_rows, 0:K].set(patches)
    data = data.at[n_img_rows:, K:K + txt_hidden].set(emb)
    data = data.at[0:n_img_rows, img_ind].set(1.0)
    data = data.at[n_img_rows:, txt_ind].set(1.0)
    data = data.at[0:n_img_rows, mask_col].set(1.0)
    data = data.at[n_img_rows:, mask_col].set(mask)

    kernel = functools.partial(
        _clip_fused_kernel, batch=B, n_patches=P, seq_len=S, patch_dim=K,
        img_feat=img_feat, txt_hidden=txt_hidden, proj_dim=proj_dim)

    vmem = pl.BlockSpec(memory_space=pltpu.MemorySpace.VMEM)
    # TODO(synk): at production batch sizes add a 'parallel' batch grid axis
    # (v7x has 2 TensorCores) with blocks sized against v7x's 64 MiB VMEM and
    # an explicit vmem_limit_bytes in pltpu.CompilerParams.
    out = pl.pallas_call(
        kernel,
        out_shape=jax.ShapeDtypeStruct((3 * BAND, LANE), f32),
        in_specs=[vmem] * 4,
        out_specs=vmem,
    )(data, packed["w1"], packed["wproj"], packed["p2"])

    i2t = out[2 * BAND:2 * BAND + B, 0:B]
    return {
        "image_embeds": out[0:B, 0:proj_dim],
        "text_embeds": out[BAND:BAND + B, 0:proj_dim],
        "logits_per_image": i2t,
        "logits_per_text": i2t.T,      # exact transpose, no extra kernel work
    }


# ----------------------------------------------------------------------------
# Parameters + pure-JAX reference (for a correctness check)
# ----------------------------------------------------------------------------

def init_params(key, *, in_ch=4, img_feat_dim=32, vocab=64, txt_hidden=32,
                proj_dim=16):
    ks = jax.random.split(key, 6)
    s = 0.02
    K = in_ch * PATCH * PATCH
    f32 = jnp.float32
    return {
        "temperature": jnp.array([1.0], dtype=f32),
        "img_w": (s * jax.random.normal(ks[0], (K, img_feat_dim))).astype(f32),
        "img_b": jnp.zeros((1, img_feat_dim), f32),
        "tok_emb": (s * jax.random.normal(ks[1], (vocab, txt_hidden))).astype(f32),
        "txt_wmix": (s * jax.random.normal(ks[2], (txt_hidden, txt_hidden))).astype(f32),
        "txt_bmix": jnp.zeros((1, txt_hidden), f32),
        "ip_w": (s * jax.random.normal(ks[3], (img_feat_dim, proj_dim))).astype(f32),
        "ip_b": jnp.zeros((1, proj_dim), f32),
        "ip_g": jnp.ones((1, proj_dim), f32),
        "ip_beta": jnp.zeros((1, proj_dim), f32),
        "tp_w": (s * jax.random.normal(ks[4], (txt_hidden, proj_dim))).astype(f32),
        "tp_b": jnp.zeros((1, proj_dim), f32),
        "tp_g": jnp.ones((1, proj_dim), f32),
        "tp_beta": jnp.zeros((1, proj_dim), f32),
    }


def clip_forward_ref(p, images, input_ids, attention_mask):
    f32 = jnp.float32
    hi = lax.Precision.HIGHEST
    patches = _patchify_nchw(images.astype(f32), PATCH)                  # [B,P,K]
    h = jnp.maximum(jnp.einsum("bpk,kf->bpf", patches, p["img_w"], precision=hi)
                    + p["img_b"].reshape(1, 1, -1), 0.0)
    img_feats = h.mean(axis=1)
    emb = jnp.take(p["tok_emb"], input_ids, axis=0)                      # [B,S,H]
    th = jnp.tanh(jnp.einsum("bsh,hk->bsk", emb, p["txt_wmix"], precision=hi)
                  + p["txt_bmix"].reshape(1, 1, -1))
    m = attention_mask.astype(f32)[..., None]
    txt_feats = (th * m).sum(axis=1) / (m.sum(axis=1) + 1e-8)

    def head(x, w, b, g, beta):
        y = jnp.dot(x, w, precision=hi) + b.reshape(1, -1)
        mu = y.mean(-1, keepdims=True)
        var = ((y - mu) ** 2).mean(-1, keepdims=True)
        yn = (y - mu) / jnp.sqrt(var + 1e-5) * g.reshape(1, -1) + beta.reshape(1, -1)
        n = jnp.sqrt((yn ** 2).sum(-1, keepdims=True))
        return yn / jnp.maximum(n, 1e-12)

    ie = head(img_feats, p["ip_w"], p["ip_b"], p["ip_g"], p["ip_beta"])
    te = head(txt_feats, p["tp_w"], p["tp_b"], p["tp_g"], p["tp_beta"])
    li = jnp.dot(ie, te.T, precision=hi) / p["temperature"].reshape(())
    return {"image_embeds": ie, "text_embeds": te,
            "logits_per_image": li, "logits_per_text": li.T}


# ----------------------------------------------------------------------------

if __name__ == "__main__":
    key = jax.random.PRNGKey(0)
    kp, ki, kt = jax.random.split(key, 3)

    B, C, H, W = 2, 4, 16, 16
    S, VOCAB = 8, 64
    IMG_FEAT, TXT_HIDDEN, PROJ_DIM = 32, 32, 16

    raw = init_params(kp, in_ch=C, img_feat_dim=IMG_FEAT, vocab=VOCAB,
                      txt_hidden=TXT_HIDDEN, proj_dim=PROJ_DIM)
    packed = pack_params(raw, patch_dim=C * PATCH * PATCH, img_feat=IMG_FEAT,
                         txt_hidden=TXT_HIDDEN, proj_dim=PROJ_DIM)

    images = jax.random.normal(ki, (B, C, H, W), dtype=jnp.float32)
    input_ids = jax.random.randint(kt, (B, S), 0, VOCAB, dtype=jnp.int32)
    attention_mask = jnp.array([[1, 1, 1, 1, 1, 1, 0, 0],
                                [1, 1, 1, 1, 1, 1, 1, 1]], dtype=jnp.int32)

    out = clip_forward(packed, images, input_ids, attention_mask,
                       img_feat=IMG_FEAT, txt_hidden=TXT_HIDDEN, proj_dim=PROJ_DIM)
    jax.block_until_ready(out)

    # correctness vs a pure-JAX f32 reference of the same synthetic module
    ref = clip_forward_ref(raw, images, input_ids, attention_mask)

    assert out["image_embeds"].shape == (B, PROJ_DIM)
    assert out["text_embeds"].shape == (B, PROJ_DIM)
    assert out["logits_per_image"].shape == (B, B)
    assert out["logits_per_text"].shape == (B, B)
    for name in ("image_embeds", "text_embeds", "logits_per_image", "logits_per_text"):
        assert bool(jnp.allclose(out[name], ref[name], atol=5e-3, rtol=5e-3)), name
    assert bool(jnp.allclose(jnp.sum(out["image_embeds"] ** 2, axis=-1),
                             jnp.ones((B,)), atol=1e-4))
    assert bool(jnp.allclose(jnp.sum(out["text_embeds"] ** 2, axis=-1),
                             jnp.ones((B,)), atol=1e-4))
    assert bool(jnp.allclose(out["logits_per_text"],
                             out["logits_per_image"].T, atol=1e-6))

    print("KERNEL_OK")
</pallas_src>

<mosaic_0001>
module attributes {stable_mosaic.version = 11 : i64} {
  func.func @_clip_fused_kernel(%arg0: memref<48x128xf32, #tpu.memory_space<vmem>>, %arg1: memref<128x128xf32, #tpu.memory_space<vmem>>, %arg2: memref<128x128xf32, #tpu.memory_space<vmem>>, %arg3: memref<8x128xf32, #tpu.memory_space<vmem>>, %arg4: memref<24x128xf32, #tpu.memory_space<vmem>>) attributes {dimension_semantics = [], scalar_prefetch = 0 : i64, scratch_operands = 0 : i64, tpu.core_type = #tpu.core_type<tc>} {
    %c0 = arith.constant 0 : index
    %c0_0 = arith.constant 0 : index
    %0 = vector.load %arg0[%c0, %c0_0] : memref<48x128xf32, #tpu.memory_space<vmem>>, vector<48x128xf32>
    %c0_1 = arith.constant 0 : index
    %c0_2 = arith.constant 0 : index
    %1 = vector.load %arg1[%c0_1, %c0_2] : memref<128x128xf32, #tpu.memory_space<vmem>>, vector<128x128xf32>
    %cst = arith.constant dense<0.000000e+00> : vector<48x128xf32>
    %2 = tpu.matmul %0, %1, %cst {dimension_numbers = #tpu.dot_dimension_numbers<[1], [0], [0], [1], [0, 0, 1, 1], [], []>} : vector<48x128xf32>, vector<128x128xf32>, vector<48x128xf32> -> vector<48x128xf32>
    %3 = tpu.iota {dimensions = array<i32: 0>} : vector<48x128xi32>
    %4 = tpu.iota {dimensions = array<i32: 1>} : vector<48x128xi32>
    %c32_i32 = arith.constant 32 : i32
    %5 = vector.broadcast %c32_i32 : i32 to vector<48x128xi32>
    %6 = arith.cmpi slt, %3, %5 : vector<48x128xi32>
    %cst_3 = arith.constant 0.000000e+00 : f32
    %7 = vector.broadcast %cst_3 : f32 to vector<48x128xf32>
    %8 = arith.maximumf %2, %7 : vector<48x128xf32>
    %9 = math.tanh %2 : vector<48x128xf32>
    %10 = arith.select %6, %8, %9 : vector<48x128xi1>, vector<48x128xf32>
    %c64_i32 = arith.constant 64 : i32
    %11 = vector.broadcast %c64_i32 : i32 to vector<48x128xi32>
    %12 = arith.cmpi eq, %4, %11 : vector<48x128xi32>
    %13 = arith.select %12, %2, %10 : vector<48x128xi1>, vector<48x128xf32>
    %c0_4 = arith.constant 0 : index
    %c98 = arith.constant 98 : index
    %14 = vector.load %arg0[%c0_4, %c98] : memref<48x128xf32, #tpu.memory_space<vmem>>, vector<48x1xf32>
    %15 = vector.broadcast %14 : vector<48x1xf32> to vector<48x128xf32>
    %16 = arith.mulf %13, %15 : vector<48x128xf32>
    %17 = tpu.iota {dimensions = array<i32: 0>} : vector<16x48xi32>
    %18 = tpu.iota {dimensions = array<i32: 1>} : vector<16x48xi32>
    %c8_i32 = arith.constant 8 : i32
    %19 = vector.broadcast %c8_i32 : i32 to vector<16x48xi32>
    %20 = arith.cmpi slt, %17, %19 : vector<16x48xi32>
    %c32_i32_5 = arith.constant 32 : i32
    %21 = vector.broadcast %c32_i32_5 : i32 to vector<16x48xi32>
    %22 = arith.cmpi slt, %18, %21 : vector<16x48xi32>
    %23 = arith.andi %20, %22 : vector<16x48xi1>
    %c16_i32 = arith.constant 16 : i32
    %24 = vector.broadcast %c16_i32 : i32 to vector<16x48xi32>
    %25 = arith.muli %17, %24 : vector<16x48xi32>
    %26 = arith.cmpi sge, %18, %25 : vector<16x48xi32>
    %27 = arith.andi %23, %26 : vector<16x48xi1>
    %c1_i32 = arith.constant 1 : i32
    %28 = vector.broadcast %c1_i32 : i32 to vector<16x48xi32>
    %29 = arith.addi %17, %28 : vector<16x48xi32>
    %c16_i32_6 = arith.constant 16 : i32
    %30 = vector.broadcast %c16_i32_6 : i32 to vector<16x48xi32>
    %31 = arith.muli %29, %30 : vector<16x48xi32>
    %32 = arith.cmpi slt, %18, %31 : vector<16x48xi32>
    %33 = arith.andi %27, %32 : vector<16x48xi1>
    %c32_i32_7 = arith.constant 32 : i32
    %34 = vector.broadcast %c32_i32_7 : i32 to vector<16x48xi32>
    %35 = arith.subi %18, %34 : vector<16x48xi32>
    %c8_i32_8 = arith.constant 8 : i32
    %36 = vector.broadcast %c8_i32_8 : i32 to vector<16x48xi32>
    %37 = arith.subi %17, %36 : vector<16x48xi32>
    %c8_i32_9 = arith.constant 8 : i32
    %38 = vector.broadcast %c8_i32_9 : i32 to vector<16x48xi32>
    %39 = arith.cmpi sge, %17, %38 : vector<16x48xi32>
    %c32_i32_10 = arith.constant 32 : i32
    %40 = vector.broadcast %c32_i32_10 : i32 to vector<16x48xi32>
    %41 = arith.cmpi sge, %18, %40 : vector<16x48xi32>
    %42 = arith.andi %39, %41 : vector<16x48xi1>
    %c8_i32_11 = arith.constant 8 : i32
    %43 = vector.broadcast %c8_i32_11 : i32 to vector<16x48xi32>
    %44 = arith.muli %37, %43 : vector<16x48xi32>
    %45 = arith.cmpi sge, %35, %44 : vector<16x48xi32>
    %46 = arith.andi %42, %45 : vector<16x48xi1>
    %c1_i32_12 = arith.constant 1 : i32
    %47 = vector.broadcast %c1_i32_12 : i32 to vector<16x48xi32>
    %48 = arith.addi %37, %47 : vector<16x48xi32>
    %c8_i32_13 = arith.constant 8 : i32
    %49 = vector.broadcast %c8_i32_13 : i32 to vector<16x48xi32>
    %50 = arith.muli %48, %49 : vector<16x48xi32>
    %51 = arith.cmpi slt, %35, %50 : vector<16x48xi32>
    %52 = arith.andi %46, %51 : vector<16x48xi1>
    %53 = arith.ori %33, %52 : vector<16x48xi1>
    %54 = arith.extui %53 : vector<16x48xi1> to vector<16x48xi32>
    %55 = arith.sitofp %54 : vector<16x48xi32> to vector<16x48xf32>
    %cst_14 = arith.constant dense<0.000000e+00> : vector<16x128xf32>
    %56 = tpu.matmul %55, %16, %cst_14 {dimension_numbers = #tpu.dot_dimension_numbers<[1], [0], [0], [1], [0, 0, 1, 1], [], []>} : vector<16x48xf32>, vector<48x128xf32>, vector<16x128xf32> -> vector<16x128xf32>
    %57 = vector.extract_strided_slice %56 {offsets = [0, 64], sizes = [16, 1], strides = [1, 1]} : vector<16x128xf32> to vector<16x1xf32>
    %58 = tpu.iota {dimensions = array<i32: 0>} : vector<16x1xi32>
    %c8_i32_15 = arith.constant 8 : i32
    %59 = vector.broadcast %c8_i32_15 : i32 to vector<16x1xi32>
    %60 = arith.cmpi slt, %58, %59 : vector<16x1xi32>
    %cst_16 = arith.constant 0.000000e+00 : f32
    %cst_17 = arith.constant 9.99999993E-9 : f32
    %61 = vector.broadcast %cst_16 : f32 to vector<16x1xf32>
    %62 = vector.broadcast %cst_17 : f32 to vector<16x1xf32>
    %63 = arith.select %60, %61, %62 : vector<16x1xi1>, vector<16x1xf32>
    %64 = arith.addf %57, %63 : vector<16x1xf32>
    %cst_18 = arith.constant 0.000000e+00 : f32
    %65 = vector.broadcast %cst_18 : f32 to vector<16x1xf32>
    %66 = arith.cmpf ogt, %64, %65 : vector<16x1xf32>
    %cst_19 = arith.constant 1.000000e+00 : f32
    %67 = vector.broadcast %cst_19 : f32 to vector<16x1xf32>
    %68 = arith.select %66, %64, %67 : vector<16x1xi1>, vector<16x1xf32>
    %69 = vector.broadcast %68 : vector<16x1xf32> to vector<16x128xf32>
    %70 = arith.divf %56, %69 : vector<16x128xf32>
    %71 = tpu.iota {dimensions = array<i32: 0>} : vector<16x128xi32>
    %72 = tpu.iota {dimensions = array<i32: 1>} : vector<16x128xi32>
    %c8_i32_20 = arith.constant 8 : i32
    %73 = vector.broadcast %c8_i32_20 : i32 to vector<16x128xi32>
    %74 = arith.cmpi slt, %71, %73 : vector<16x128xi32>
    %c0_21 = arith.constant 0 : index
    %c0_22 = arith.constant 0 : index
    %75 = vector.load %arg3[%c0_21, %c0_22] : memref<8x128xf32, #tpu.memory_space<vmem>>, vector<1x128xf32>
    %c3 = arith.constant 3 : index
    %c0_23 = arith.constant 0 : index
    %76 = vector.load %arg3[%c3, %c0_23] : memref<8x128xf32, #tpu.memory_space<vmem>>, vector<1x128xf32>
    %77 = vector.shape_cast %75 : vector<1x128xf32> to vector<1x128xf32>
    %78 = vector.broadcast %77 : vector<1x128xf32> to vector<16x128xf32>
    %79 = vector.shape_cast %76 : vector<1x128xf32> to vector<1x128xf32>
    %80 = vector.broadcast %79 : vector<1x128xf32> to vector<16x128xf32>
    %81 = arith.select %74, %78, %80 : vector<16x128xi1>, vector<16x128xf32>
    %c1 = arith.constant 1 : index
    %c0_24 = arith.constant 0 : index
    %82 = vector.load %arg3[%c1, %c0_24] : memref<8x128xf32, #tpu.memory_space<vmem>>, vector<1x128xf32>
    %c4 = arith.constant 4 : index
    %c0_25 = arith.constant 0 : index
    %83 = vector.load %arg3[%c4, %c0_25] : memref<8x128xf32, #tpu.memory_space<vmem>>, vector<1x128xf32>
    %84 = vector.shape_cast %82 : vector<1x128xf32> to vector<1x128xf32>
    %85 = vector.broadcast %84 : vector<1x128xf32> to vector<16x128xf32>
    %86 = vector.shape_cast %83 : vector<1x128xf32> to vector<1x128xf32>
    %87 = vector.broadcast %86 : vector<1x128xf32> to vector<16x128xf32>
    %88 = arith.select %74, %85, %87 : vector<16x128xi1>, vector<16x128xf32>
    %c2 = arith.constant 2 : index
    %c0_26 = arith.constant 0 : index
    %89 = vector.load %arg3[%c2, %c0_26] : memref<8x128xf32, #tpu.memory_space<vmem>>, vector<1x128xf32>
    %c5 = arith.constant 5 : index
    %c0_27 = arith.constant 0 : index
    %90 = vector.load %arg3[%c5, %c0_27] : memref<8x128xf32, #tpu.memory_space<vmem>>, vector<1x128xf32>
    %91 = vector.shape_cast %89 : vector<1x128xf32> to vector<1x128xf32>
    %92 = vector.broadcast %91 : vector<1x128xf32> to vector<16x128xf32>
    %93 = vector.shape_cast %90 : vector<1x128xf32> to vector<1x128xf32>
    %94 = vector.broadcast %93 : vector<1x128xf32> to vector<16x128xf32>
    %95 = arith.select %74, %92, %94 : vector<16x128xi1>, vector<16x128xf32>
    %c0_28 = arith.constant 0 : index
    %c0_29 = arith.constant 0 : index
    %96 = vector.load %arg2[%c0_28, %c0_29] : memref<128x128xf32, #tpu.memory_space<vmem>>, vector<128x128xf32>
    %cst_30 = arith.constant dense<0.000000e+00> : vector<16x128xf32>
    %97 = tpu.matmul %70, %96, %cst_30 {dimension_numbers = #tpu.dot_dimension_numbers<[1], [0], [0], [1], [0, 0, 1, 1], [], []>} : vector<16x128xf32>, vector<128x128xf32>, vector<16x128xf32> -> vector<16x128xf32>
    %98 = arith.addf %97, %81 : vector<16x128xf32>
    %c16_i32_31 = arith.constant 16 : i32
    %99 = vector.broadcast %c16_i32_31 : i32 to vector<16x128xi32>
    %100 = arith.cmpi slt, %72, %99 : vector<16x128xi32>
    %101 = arith.extui %100 : vector<16x128xi1> to vector<16x128xi32>
    %102 = arith.sitofp %101 : vector<16x128xi32> to vector<16x128xf32>
    %cst_32 = arith.constant dense<0.000000e+00> : vector<16xf32>
    %103 = vector.multi_reduction <add>, %98, %cst_32 [1] : vector<16x128xf32> to vector<16xf32>
    %104 = vector.shape_cast %103 : vector<16xf32> to vector<16x1xf32>
    %cst_33 = arith.constant 6.250000e-02 : f32
    %105 = vector.broadcast %cst_33 : f32 to vector<16x1xf32>
    %106 = arith.mulf %104, %105 : vector<16x1xf32>
    %107 = vector.broadcast %106 : vector<16x1xf32> to vector<16x128xf32>
    %108 = arith.subf %98, %107 : vector<16x128xf32>
    %109 = arith.mulf %108, %102 : vector<16x128xf32>
    %110 = arith.mulf %109, %109 : vector<16x128xf32>
    %cst_34 = arith.constant dense<0.000000e+00> : vector<16xf32>
    %111 = vector.multi_reduction <add>, %110, %cst_34 [1] : vector<16x128xf32> to vector<16xf32>
    %112 = vector.shape_cast %111 : vector<16xf32> to vector<16x1xf32>
    %cst_35 = arith.constant 6.250000e-02 : f32
    %113 = vector.broadcast %cst_35 : f32 to vector<16x1xf32>
    %114 = arith.mulf %112, %113 : vector<16x1xf32>
    %cst_36 = arith.constant 9.99999974E-6 : f32
    %115 = vector.broadcast %cst_36 : f32 to vector<16x1xf32>
    %116 = arith.addf %114, %115 : vector<16x1xf32>
    %117 = math.rsqrt %116 : vector<16x1xf32>
    %118 = vector.broadcast %117 : vector<16x1xf32> to vector<16x128xf32>
    %119 = arith.mulf %109, %118 : vector<16x128xf32>
    %120 = arith.mulf %119, %88 : vector<16x128xf32>
    %121 = arith.addf %120, %95 : vector<16x128xf32>
    %122 = arith.mulf %121, %121 : vector<16x128xf32>
    %cst_37 = arith.constant dense<0.000000e+00> : vector<16xf32>
    %123 = vector.multi_reduction <add>, %122, %cst_37 [1] : vector<16x128xf32> to vector<16xf32>
    %124 = vector.shape_cast %123 : vector<16xf32> to vector<16x1xf32>
    %cst_38 = arith.constant 1.000000e-24 : f32
    %125 = vector.broadcast %cst_38 : f32 to vector<16x1xf32>
    %126 = arith.maximumf %124, %125 : vector<16x1xf32>
    %127 = math.rsqrt %126 : vector<16x1xf32>
    %128 = vector.broadcast %127 : vector<16x1xf32> to vector<16x128xf32>
    %129 = arith.mulf %121, %128 : vector<16x128xf32>
    %c2_i32 = arith.constant 2 : i32
    %130 = vector.broadcast %c2_i32 : i32 to vector<16x128xi32>
    %131 = arith.cmpi slt, %71, %130 : vector<16x128xi32>
    %c8_i32_39 = arith.constant 8 : i32
    %132 = vector.broadcast %c8_i32_39 : i32 to vector<16x128xi32>
    %133 = arith.cmpi sge, %71, %132 : vector<16x128xi32>
    %c10_i32 = arith.constant 10 : i32
    %134 = vector.broadcast %c10_i32 : i32 to vector<16x128xi32>
    %135 = arith.cmpi slt, %71, %134 : vector<16x128xi32>
    %136 = arith.andi %133, %135 : vector<16x128xi1>
    %137 = arith.ori %131, %136 : vector<16x128xi1>
    %138 = arith.extui %137 : vector<16x128xi1> to vector<16x128xi32>
    %139 = arith.sitofp %138 : vector<16x128xi32> to vector<16x128xf32>
    %140 = arith.mulf %129, %139 : vector<16x128xf32>
    %c0_40 = arith.constant 0 : index
    %c0_41 = arith.constant 0 : index
    %141 = vector.load %arg4[%c0_40, %c0_41] : memref<24x128xf32, #tpu.memory_space<vmem>>, vector<16x128xf32>
    tpu.vector_store %arg4[%c0_40, %c0_41], %140 {strides = array<i32>} : memref<24x128xf32, #tpu.memory_space<vmem>>, vector<16x128xf32>,
    %142 = vector.extract_strided_slice %140 {offsets = [0, 0], sizes = [8, 128], strides = [1, 1]} : vector<16x128xf32> to vector<8x128xf32>
    %c6 = arith.constant 6 : index
    %c0_42 = arith.constant 0 : index
    %143 = vector.load %arg3[%c6, %c0_42] : memref<8x128xf32, #tpu.memory_space<vmem>>, vector<1x128xf32>
    %144 = vector.broadcast %143 : vector<1x128xf32> to vector<8x128xf32>
    %145 = arith.mulf %142, %144 : vector<8x128xf32>
    %146 = vector.extract_strided_slice %140 {offsets = [8, 0], sizes = [8, 128], strides = [1, 1]} : vector<16x128xf32> to vector<8x128xf32>
    %cst_43 = arith.constant dense<0.000000e+00> : vector<8x8xf32>
    %147 = tpu.matmul %145, %146, %cst_43 {dimension_numbers = #tpu.dot_dimension_numbers<[1], [1], [0], [0], [0, 0, 1, 0], [], []>} : vector<8x128xf32>, vector<8x128xf32>, vector<8x8xf32> -> vector<8x8xf32>
    %cst_44 = arith.constant 0.000000e+00 : f32
    %148 = vector.broadcast %cst_44 : f32 to vector<8x128xf32>
    %c16 = arith.constant 16 : index
    %c0_45 = arith.constant 0 : index
    %149 = vector.load %arg4[%c16, %c0_45] : memref<24x128xf32, #tpu.memory_space<vmem>>, vector<8x128xf32>
    tpu.vector_store %arg4[%c16, %c0_45], %148 {strides = array<i32>} : memref<24x128xf32, #tpu.memory_space<vmem>>, vector<8x128xf32>,
    %c16_46 = arith.constant 16 : index
    %c0_47 = arith.constant 0 : index
    %150 = vector.load %arg4[%c16_46, %c0_47] : memref<24x128xf32, #tpu.memory_space<vmem>>, vector<8x8xf32>
    tpu.vector_store %arg4[%c16_46, %c0_47], %147 {strides = array<i32>} : memref<24x128xf32, #tpu.memory_space<vmem>>, vector<8x8xf32>,
    return
  }
}

</mosaic_0001>

<bundles_post_ra>
// kernel: clip_forward.1
= control target key start
LH: loop header
LB: loop body
LE: loop exit
PB: predicated region body
PF: predicated region fallthrough
CT: control target
= control target key end

     0   :  { %v814_v2 = vmov 98   ;;  %v134_v23 = vlaneseq  ;;  %v815_v29 = vmov 0.0   ;;  %vm255_vm5 = vcmask 392192   ;;  %s1028_s1 = inlined_call_operand.vmem [shape: f32[128,128], index: 1, kind: input, shape index: {}]   ;;  %s1029_s0 = inlined_call_operand.vmem [shape: f32[48,128], index: 0, kind: input, shape index: {}]   ;;  %s1030_s2 = inlined_call_operand.vmem [shape: f32[128,128], index: 2, kind: input, shape index: {}]   ;;  %s1031_s3 = inlined_call_operand.vmem [shape: f32[8,128], index: 3, kind: input, shape index: {}]   ;;  %s1032_s4 = inlined_call_operand.vmem [shape: f32[24,128], index: 4, kind: output, shape index: {}]  }
   0x1   :  { %v38_v0 = vld [vmem:[%s1028_s1 + $0x78] sm:$0xff]  ;;  %v37_v1 = vld [vmem:[%s1028_s1 + $0x70] sm:$0xff]  ;;  %794 = vset.pattern.permute.xlu0 %v814_v2  ;;  %795 = vset.pattern.permute.xlu1 %v814_v2  ;;  %v36_v3 = vld [vmem:[%s1028_s1 + $0x68] sm:$0xff]  ;;  %621 = vst [vmem:[%s1032_s4 + $0x10] sm:$0xff] %v815_v29  ;;  %vm817_vm15 = vmmov 0  }
   0x2   :  { %694 = vmatprep.subr.mxu0 %v38_v0  ;;  %v35_v4 = vld [vmem:[%s1028_s1 + $0x60] sm:$0xff]  ;;  %v34_v6 = vld [vmem:[%s1028_s1 + $0x58] sm:$0xff]  ;;  %v22_v8 = vld [vmem:[%s1029_s0 + $0x28] sm:$0xff]  ;;  %v909_v24 = vshrl.u32 %v134_v23, 7  ;;  %v912_v26 = vand.u32 127, %v134_v23 }
   0x3   :  { %695 = vmatpush3.msra.mxu0 %v38_v0  ;;  %v17_v5 = vld [vmem:[%s1029_s0] sm:$0xff]  ;;  %v20_v7 = vld [vmem:[%s1029_s0 + $0x18] sm:$0xff]  ;;  %v33_v9 = vld [vmem:[%s1028_s1 + $0x50] sm:$0xff]  ;;  %201 = vperm.xlu0 %794, %v22_v8  }
   0x4   :  { %696 = vmatprep.subr.mxu0 %v37_v1  ;;  %726 = vmatprep.mubr.f32.mxu0 %v17_v5  ;;  %v32_v10 = vld [vmem:[%s1028_s1 + $0x48] sm:$0xff]  ;;  %v19_v11 = vld [vmem:[%s1029_s0 + $0x10] sm:$0xff]  ;;  %v21_v12 = vld [vmem:[%s1029_s0 + $0x20] sm:$0xff]  ;;  %v221_v25 = vadd.s32 1, %v909_v24  ;;  %v215_v27 = vmul.u32 16, %v909_v24  ;;  %vm212_vm0 = vcmp.lt.s32.totalorder %v912_v26, 32 }
   0x5   :  { %697 = vmatpush3.msra.mxu0 %v37_v1  ;;  %191 = vperm.xlu1 %795, %v20_v7   ;;  %v31_v13 = vld [vmem:[%s1028_s1 + $0x40] sm:$0xff]  ;;  %v30_v14 = vld [vmem:[%s1028_s1 + $0x38] sm:$0xff]  ;;  %v18_v15 = vld [vmem:[%s1029_s0 + $0x8] sm:$0xff]  ;;  %vm167_vm6 = vcmp.eq.s32.totalorder %v912_v26, 64  ;;  %v628_v41 = vadd.s32 4294967264, %v912_v26  ;;  %v237_v42 = vmul.u32 8, %v909_v24 }
   0x6   :  { %698 = vmatprep.subr.mxu0 %v36_v3  ;;  %v29_v16 = vld [vmem:[%s1028_s1 + $0x30] sm:$0xff]  ;;  %v28_v17 = vld [vmem:[%s1028_s1 + $0x28] sm:$0xff]  ;;  %v27_v18 = vld [vmem:[%s1028_s1 + $0x20] sm:$0xff]  ;;  %v223_v28 = vmul.u32 16, %v221_v25  ;;  %vm217_vm1 = vcmp.ge.s32.totalorder %v912_v26, %v215_v27  ;;  %v244_v52 = vmul.u32 8, %v221_v25  ;;  %vm233_vm7 = vcmp.ge.s32.totalorder %v912_v26, 32 }
   0x7   :  { %699 = vmatpush3.msra.mxu0 %v36_v3  ;;  %196 = vperm.xlu0 %794, %v21_v12   ;;  %v26_v19 = vld [vmem:[%s1028_s1 + $0x18] sm:$0xff]  ;;  %v25_v20 = vld [vmem:[%s1028_s1 + $0x10] sm:$0xff]  ;;  %v24_v21 = vld [vmem:[%s1028_s1 + $0x8] sm:$0xff]  ;;  %vm239_vm8 = vcmp.ge.s32.totalorder %v628_v41, %v237_v42  ;;  %v816_v1 = vmov 64   ;;  %vm486_vm14 = vcmp.lt.s32.totalorder %v912_v26, 16 }
   0x8   :  { %700 = vmatprep.subr.mxu0 %v35_v4  ;;  %v23_v22 = vld [vmem:[%s1028_s1] sm:$0xff]  ;;  %vm219_vm2 = vmand %vm212_vm0, %vm217_vm1  ;;  %vm225_vm3 = vcmp.lt.s32.totalorder %v912_v26, %v223_v28  ;;  %vm246_vm10 = vcmp.lt.s32.totalorder %v628_v41, %v244_v52  ;;  %v410_v2 = vld [vmem:[%s1030_s2 + $0x78] sm:$0xff]  ;;  %v640_v41 = vsel %vm486_vm14, 1.0, %v815_v29  ;;  %vm529_vm1 = vcmp.lt.s32.totalorder %v909_v24, 2 }
   0x9   :  { %701 = vmatpush3.msra.mxu0 %v35_v4  ;;  %186 = vperm.xlu1 %795, %v19_v11   ;;  %vm227_vm4 = vmand %vm219_vm2, %vm225_vm3  ;;  %v409_v3 = vld [vmem:[%s1030_s2 + $0x70] sm:$0xff]  ;;  %v408_v4 = vld [vmem:[%s1030_s2 + $0x68] sm:$0xff]  ;;  %vm622_vm2 = vcmask 64512  }
   0xa   :  { %702 = vmatprep.subr.mxu0 %v34_v6  ;;  %v630_v30 = vsel %vm227_vm4, 1.0, %v815_v29  ;;  %vm241_vm9 = vmand %vm233_vm7, %vm239_vm8 }
   0xb   :  { %703 = vmatpush3.msra.mxu0 %v34_v6  ;;  %181 = vperm.xlu0 %794, %v18_v15   ;;  %vm248_vm11 = vmand %vm241_vm9, %vm246_vm10  ;;  %v406_v6 = vld [vmem:[%s1030_s2 + $0x58] sm:$0xff] }
   0xc   :  { %704 = vmatprep.subr.mxu0 %v33_v9  ;;  %747 = vmatprep.mubr.msk.f32.mxu1 %vm255_vm5, %v630_v30  ;;  %v631_v0 = vsel %vm248_vm11, 1.0, %v815_v29 }
   0xd   :  { %705 = vmatpush3.msra.mxu0 %v33_v9  ;;  %176 = vperm.xlu1 %795, %v17_v5   ;;  %v407_v5 = vld [vmem:[%s1030_s2 + $0x60] sm:$0xff] }
   0xe   :  { %706 = vmatprep.subr.mxu0 %v32_v10  ;;  %v403_v9 = vld [vmem:[%s1030_s2 + $0x40] sm:$0xff] }
   0xf   :  { %707 = vmatpush3.msra.mxu0 %v32_v10  ;;  %796 = vset.pattern.permute.xlu0 %v816_v1 }
  0x10   :  { %708 = vmatprep.subr.mxu0 %v31_v13 }
  0x11   :  { %709 = vmatpush3.msra.mxu0 %v31_v13  ;;  %797 = vset.pattern.permute.xlu1 %v816_v1  ;;  %v402_v13 = vld [vmem:[%s1030_s2 + $0x38] sm:$0xff] }
  0x12   :  { %710 = vmatprep.subr.mxu0 %v30_v14 }
  0x13   :  { %711 = vmatpush3.msra.mxu0 %v30_v14  ;;  %v401_v14 = vld [vmem:[%s1030_s2 + $0x30] sm:$0xff] }
  0x14   :  { %712 = vmatprep.subr.mxu0 %v29_v16 }
  0x15   :  { %713 = vmatpush3.msra.mxu0 %v29_v16 }
  0x16   :  { %714 = vmatprep.subr.mxu0 %v28_v17 }
  0x17   :  { %715 = vmatpush3.msra.mxu0 %v28_v17  ;;  %v400_v17 = vld [vmem:[%s1030_s2 + $0x28] sm:$0xff] }
  0x18   :  { %716 = vmatprep.subr.mxu0 %v27_v18 }
  0x19   :  { %717 = vmatpush3.msra.mxu0 %v27_v18  ;;  %v399_v18 = vld [vmem:[%s1030_s2 + $0x20] sm:$0xff] }
  0x1a   :  { %718 = vmatprep.subr.mxu0 %v26_v19 }
  0x1b   :  { %719 = vmatpush3.msra.mxu0 %v26_v19  ;;  %v398_v19 = vld [vmem:[%s1030_s2 + $0x18] sm:$0xff] }
  0x1c   :  { %720 = vmatprep.subr.mxu0 %v25_v20 }
  0x1d   :  { %721 = vmatpush3.msra.mxu0 %v25_v20  ;;  %v397_v20 = vld [vmem:[%s1030_s2 + $0x10] sm:$0xff] }
  0x1e   :  { %722 = vmatprep.subr.mxu0 %v24_v21 }
  0x1f   :  { %723 = vmatpush3.msra.mxu0 %v24_v21  ;;  %v396_v21 = vld [vmem:[%s1030_s2 + $0x8] sm:$0xff] }
  0x20   :  { %724 = vmatprep.subr.mxu0 %v23_v22 }
  0x21   :  { %725 = vmatpush3.msra.mxu0 %v23_v22  ;;  %v395_v22 = vld [vmem:[%s1030_s2] sm:$0xff] }
  0x22   :  { %727 = vmatmul.mubr.f32.vlgmr.msra.gmra.mxu0 %v18_v15  ;;  %785 = vmatprep.subr.mxu0 %v815_v29 }
  0x23   :  { %729 = vmatprep.mubr.f32.mxu0 %v19_v11 }
  0x26   :  { %730 = vmatmul.mubr.f32.gmra.mxu0 %v20_v7  ;;  %v405_v7 = vld [vmem:[%s1030_s2 + $0x50] sm:$0xff] }
  0x27   :  { %732 = vmatprep.mubr.f32.mxu0 %v21_v12 }
  0x2a   :  { %733 = vmatmul.mubr.f32.gmra.mxu0 %v22_v8  ;;  %v404_v8 = vld [vmem:[%s1030_s2 + $0x48] sm:$0xff] }
  0x2b   :  { %787 = vmatprep.mubr.msk.f32.mxu0 %vm817_vm15, %v815_v29 }
  0x7e   :  { %v202_v37 = vpop.permute.xlu0 %201 }
  0x80   :  { %v192_v38 = vpop.permute.xlu1 %191 }
  0x82   :  { %v197_v43 = vpop.permute.xlu0 %196 }
  0x84   :  { %v187_v49 = vpop.permute.xlu1 %186 }
  0x86   :  { %v182_v57 = vpop.permute.xlu0 %181 }
  0x88   :  { %v177_v60 = vpop.permute.xlu1 %176 }
  0xe2   :  { %v728_v31 = vpop.f32.mrf.mxu0 }
  0xe3   :  { %v150_v48 = vmax.f32 %v728_v31, 0.0 }
  0xe4   :  { %v105_v32 = vpop.f32.mrf.mxu0 }
  0xe5   :  { %v149_v54 = vmax.f32 %v105_v32, 0.0  ;;  %v169_v58 = vsel %vm167_vm6, %v728_v31, %v150_v48 }
  0xe6   :  { %v731_v33 = vpop.f32.mrf.mxu0  ;;  %v205_v62 = vmul.f32 %v182_v57, %v169_v58  ;;  %v639_v58 = vld [vmem:[%s1031_s3 + $0x5] ss:$0 sm:$0xff] }
  0xe7   :  { %v152_v39 = vmax.f32 %v731_v33, 0.0  ;;  %v168_v61 = vsel %vm167_vm6, %v105_v32, %v149_v54  ;;  %v635_v32 = vld [vmem:[%s1031_s3 + $0x3] ss:$0 sm:$0xff] }
  0xe8   :  { %v115_v34 = vpop.f32.mrf.mxu0  ;;  %v204_v63 = vmul.f32 %v177_v60, %v168_v61 }
  0xe9   :  { %v151_v44 = vmax.f32 %v115_v34, 0.0  ;;  %v171_v50 = vsel %vm167_vm6, %v731_v33, %v152_v39 }
  0xea   :  { %v734_v35 = vpop.f32.mrf.mxu0  ;;  %v207_v56 = vmul.f32 %v192_v38, %v171_v50 }
  0xeb   :  { %798 = vtanh.f32 %v734_v35  ;;  %v170_v55 = vsel %vm167_vm6, %v115_v34, %v151_v44  ;;  %v634_v34 = vld [vmem:[%s1031_s3] ss:$0 sm:$0xff] }
  0xec   :  { %v125_v36 = vpop.f32.mrf.mxu0  ;;  %v206_v59 = vmul.f32 %v187_v49, %v170_v55  ;;  %v637_v55 = vld [vmem:[%s1031_s3 + $0x4] ss:$0 sm:$0xff] }
  0xed   :  { %800 = vtanh.f32 %v125_v36 }
  0xf8   :  { %v799_v40 = vpop.eup %798 }
  0xf9   :  { %v173_v45 = vsel %vm167_vm6, %v734_v35, %v799_v40 }
  0xfa   :  { %v801_v46 = vpop.eup %800  ;;  %v209_v47 = vmul.f32 %v202_v37, %v173_v45 }
  0xfb   :  { %v172_v51 = vsel %vm167_vm6, %v125_v36, %v801_v46 }
  0xfc   :  { %v208_v53 = vmul.f32 %v197_v43, %v172_v51  ;;  %735 = vmatprep.subr.mxu1 %v209_v47 }
  0xfd   :  { %736 = vmatpush3.msra.mxu1 %v209_v47 }
  0xfe   :  { %737 = vmatprep.subr.mxu1 %v208_v53 }
  0xff   :  { %738 = vmatpush3.msra.mxu1 %v208_v53 }
 0x100   :  { %739 = vmatprep.subr.mxu1 %v207_v56 }
 0x101   :  { %740 = vmatpush3.msra.mxu1 %v207_v56 }
 0x102   :  { %741 = vmatprep.subr.mxu1 %v206_v59 }
 0x103   :  { %742 = vmatpush3.msra.mxu1 %v206_v59  ;;  %v636_v59 = vld [vmem:[%s1031_s3 + $0x1] ss:$0 sm:$0xff] }
 0x104   :  { %743 = vmatprep.subr.mxu1 %v205_v62 }
 0x105   :  { %744 = vmatpush3.msra.mxu1 %v205_v62  ;;  %v638_v62 = vld [vmem:[%s1031_s3 + $0x2] ss:$0 sm:$0xff] }
 0x106   :  { %745 = vmatprep.subr.mxu1 %v204_v63 }
 0x107   :  { %746 = vmatpush3.msra.mxu1 %v204_v63 }
 0x108   :  { %748 = vmatmul.mubr.msk.f32.vlgmr.msra.gmra.mxu1 %vm255_vm5, %v631_v0  ;;  %750 = vmatprep.subr.mxu1 %v410_v2 }
 0x109   :  { %751 = vmatpush3.msra.mxu1 %v410_v2 }
 0x10a   :  { %752 = vmatprep.subr.mxu1 %v409_v3 }
 0x10b   :  { %753 = vmatpush3.msra.mxu1 %v409_v3 }
 0x10c   :  { %754 = vmatprep.subr.mxu1 %v408_v4 }
 0x10d   :  { %755 = vmatpush3.msra.mxu1 %v408_v4 }
 0x10e   :  { %756 = vmatprep.subr.mxu1 %v407_v5 }
 0x10f   :  { %757 = vmatpush3.msra.mxu1 %v407_v5 }
 0x110   :  { %758 = vmatprep.subr.mxu1 %v406_v6 }
 0x111   :  { %759 = vmatpush3.msra.mxu1 %v406_v6 }
 0x112   :  { %760 = vmatprep.subr.mxu1 %v405_v7 }
 0x113   :  { %761 = vmatpush3.msra.mxu1 %v405_v7 }
 0x114   :  { %762 = vmatprep.subr.mxu1 %v404_v8 }
 0x115   :  { %763 = vmatpush3.msra.mxu1 %v404_v8  ;;  %v136_v8 = vadd.s32 8, %v909_v24 }
 0x116   :  { %764 = vmatprep.subr.mxu1 %v403_v9 }
 0x117   :  { %765 = vmatpush3.msra.mxu1 %v403_v9  ;;  %vm532_vm0 = vcmp.lt.s32.totalorder %v136_v8, 10 }
 0x118   :  { %766 = vmatprep.subr.mxu1 %v402_v13 }
 0x119   :  { %767 = vmatpush3.msra.mxu1 %v402_v13  ;;  %v641_v13 = vsel %vm529_vm1, 1.0, %v815_v29 }
 0x11a   :  { %768 = vmatprep.subr.mxu1 %v401_v14 }
 0x11b   :  { %769 = vmatpush3.msra.mxu1 %v401_v14 }
 0x11c   :  { %770 = vmatprep.subr.mxu1 %v400_v17 }
 0x11d   :  { %771 = vmatpush3.msra.mxu1 %v400_v17 }
 0x11e   :  { %772 = vmatprep.subr.mxu1 %v399_v18 }
 0x11f   :  { %773 = vmatpush3.msra.mxu1 %v399_v18 }
 0x120   :  { %774 = vmatprep.subr.mxu1 %v398_v19 }
 0x121   :  { %775 = vmatpush3.msra.mxu1 %v398_v19 }
 0x122   :  { %776 = vmatprep.subr.mxu1 %v397_v20 }
 0x123   :  { %777 = vmatpush3.msra.mxu1 %v397_v20 }
 0x124   :  { %778 = vmatprep.subr.mxu1 %v396_v21 }
 0x125   :  { %779 = vmatpush3.msra.mxu1 %v396_v21 }
 0x126   :  { %780 = vmatprep.subr.mxu1 %v395_v22 }
 0x127   :  { %781 = vmatpush3.msra.mxu1 %v395_v22 }
 0x1c8   :  { %v749_v10 = vpop.f32.mrf.mxu1 }
 0x1c9   :  { %v340_v11 = vadd.f32 1e-08, %v749_v10 }
 0x1ca   :  { %v328_v12 = vpop.f32.mrf.mxu1 }
 0x1cb   :  { %vm342_vm12 = vcmp.gt.f32.partialorder %v340_v11, 0.0  ;;  %vm341_vm13 = vcmp.gt.f32.partialorder %v328_v12, 0.0 }
 0x1cc   :  { %v344_v15 = vsel %vm342_vm12, %v340_v11, 1.0  ;;  %v343_v16 = vsel %vm341_vm13, %v328_v12, 1.0 }
 0x1cd   :  { %352 = vperm.xlu1 %797, %v344_v15   ;;  %347 = vperm.xlu0 %796, %v343_v16   ;;  %v643_v16 = vld [vmem:[%s1031_s3 + $0x6] ss:$0 sm:$0xff] }
 0x248   :  { %v353_v23 = vpop.permute.xlu1 %352  ;;  %v348_v25 = vpop.permute.xlu0 %347 }
 0x249   :  { %802 = vrcp.f32 %v353_v23 }
 0x24a   :  { %804 = vrcp.f32 %v348_v25 }
 0x256   :  { %v803_v27 = vpop.eup %802 }
 0x257   :  { %v805_v28 = vpop.eup %804  ;;  %v358_v30 = vmul.f32 %v803_v27, %v749_v10  ;;  %v642_v10 = vsel %vm532_vm0, 1.0, %v815_v29 }
 0x258   :  { %v356_v31 = vmul.f32 %v805_v28, %v328_v12 }
 0x25a   :  { %782 = vmatprep.mubr.f32.mxu1 %v356_v31 }
 0x25b   :  { %783 = vmatmul.mubr.f32.vlgmr.msra.gmra.mxu1 %v358_v30 }
 0x31b   :  { %v784_v33 = vpop.f32.mrf.mxu1 }
 0x31c   :  { %v483_v35 = vadd.f32 %v784_v33, %v635_v32 }
 0x31d   :  { %v477_v36 = vpop.f32.mrf.mxu1 }
 0x31e   :  { %v478_v37 = vadd.f32 %v634_v34, %v477_v36  ;;  %491 = vadd.xlane.f32.xlu1 %v483_v35 }
 0x320   :  { %489 = vadd.xlane.f32.xlu0 %v478_v37 }
 0x3a7   :  { %v492_v38 = vpop.xlane.xlu1 %491 }
 0x3a8   :  { %v494_v39 = vmul.f32 0.0625, %v492_v38 }
 0x3a9   :  { %v490_v40 = vpop.xlane.xlu0 %489 }
 0x3aa   :  { %v496_v42 = vsub.f32 %v483_v35, %v494_v39  ;;  %v493_v43 = vmul.f32 0.0625, %v490_v40 }
 0x3ac   :  { %v495_v44 = vsub.f32 %v478_v37, %v493_v43  ;;  %v498_v45 = vmul.f32 %v640_v41, %v496_v42 }
 0x3ae   :  { %v500_v46 = vmul.f32 %v498_v45, %v498_v45  ;;  %v497_v47 = vmul.f32 %v640_v41, %v495_v44 }
 0x3b0   :  { %503 = vadd.xlane.f32.xlu0 %v500_v46  ;;  %v499_v48 = vmul.f32 %v497_v47, %v497_v47 }
 0x3b2   :  { %501 = vadd.xlane.f32.xlu1 %v499_v48 }
 0x439   :  { %v504_v49 = vpop.xlane.xlu0 %503 }
 0x43a   :  { %v506_v50 = vmul.f32 0.0625, %v504_v49 }
 0x43b   :  { %v502_v51 = vpop.xlane.xlu1 %501 }
 0x43c   :  { %v508_v52 = vadd.f32 1e-05, %v506_v50  ;;  %v505_v53 = vmul.f32 0.0625, %v502_v51 }
 0x43e   :  { %806 = vrsqrt.f32 %v508_v52  ;;  %v507_v26 = vadd.f32 1e-05, %v505_v53 }
 0x440   :  { %808 = vrsqrt.f32 %v507_v26 }
 0x44b   :  { %v807_v54 = vpop.eup %806 }
 0x44c   :  { %v512_v56 = vmul.f32 %v807_v54, %v498_v45 }
 0x44d   :  { %v809_v57 = vpop.eup %808 }
 0x44e   :  { %v514_v60 = vmul.f32 %v637_v55, %v512_v56  ;;  %v511_v61 = vmul.f32 %v809_v57, %v497_v47 }
 0x450   :  { %v516_v63 = vadd.f32 %v639_v58, %v514_v60  ;;  %v513_v0 = vmul.f32 %v636_v59, %v511_v61 }
 0x452   :  { %v518_v1 = vmul.f32 %v516_v63, %v516_v63  ;;  %v515_v2 = vadd.f32 %v638_v62, %v513_v0 }
 0x454   :  { %521 = vadd.xlane.f32.xlu0 %v518_v1  ;;  %v517_v3 = vmul.f32 %v515_v2, %v515_v2 }
 0x456   :  { %519 = vadd.xlane.f32.xlu1 %v517_v3 }
 0x4dd   :  { %v522_v4 = vpop.xlane.xlu0 %521 }
 0x4de   :  { %v524_v5 = vmax.f32 %v522_v4, 1e-24 }
 0x4df   :  { %v520_v6 = vpop.xlane.xlu1 %519 }
 0x4e0   :  { %810 = vrsqrt.f32 %v524_v5  ;;  %v523_v7 = vmax.f32 %v520_v6, 1e-24 }
 0x4e2   :  { %812 = vrsqrt.f32 %v523_v7 }
 0x4ed   :  { %v811_v9 = vpop.eup %810 }
 0x4ee   :  { %v528_v11 = vmul.f32 %v811_v9, %v516_v63 }
 0x4ef   :  { %v813_v12 = vpop.eup %812 }
 0x4f0   :  { %v527_v14 = vmul.f32 %v813_v12, %v515_v2  ;;  %v542_v15 = vmul.f32 %v642_v10, %v528_v11 }
 0x4f2   :  { %786 = vmatpush3.xpose.msra.mxu0 %v542_v15  ;;  %v541_v17 = vmul.f32 %v641_v13, %v527_v14  ;;  %544 = vst [vmem:[%s1032_s4 + $0x8] sm:$0xff] %v542_v15 }
 0x4f4   :  { %v550_v24 = vmul.f32 %v643_v16, %v541_v17  ;;  %543 = vst [vmem:[%s1032_s4] sm:$0xff] %v541_v17 }
 0x4f6   :  { %788 = vmatmul.mubr.f32.vlgmr.msra.gmra.mxu0 %v550_v24 }
 0x5b6   :  { %v617_v29 = vpop.f32.mrf.mxu0 }
 0x5b7   :  { %623 = vst.msk [vmem:[%s1032_s4 + $0x10] sm:$0xff] %vm622_vm2, %v617_v29 }
 0x5b8   :  { %v789_v18 = vpop.f32.mrf.mxu0 }

</bundles_post_ra>
